<compile_context>
chip_gen: v7x
topology: tpu7x:2x2x1
jax: 0.10.0
libtpu: 0.0.40
codegen_flags: <defaults>
</compile_context>

<pallas_src>
import jax
import jax.numpy as jnp
import numpy as np
from jax.experimental import pallas as pl
from jax.experimental.pallas import tpu as pltpu


# -----------------------------------------------------------------------------
# Fused kernel: img_embs gather (via data-dependent index_map) + synthetic
# stand-in for apply_model_func (the real UNet is external):
#   out[b] = x[b]*(1 + 0.1*t[b]) + c_latents[b]
#            + mean(img_emb[b]) + mean(c_crossattn[b]) + 0.01*fs[b]
# -----------------------------------------------------------------------------
def _make_fused_kernel(e_per_cond):
    def kernel(cond_ref, x_ref, lat_ref, emb_ref, ca_ref, t_ref, fs_ref, o_ref):
        # cond_ref (scalar prefetch) is consumed by the index_maps: it selects
        # which bank row emb_ref was DMA'd from for this grid step.
        del cond_ref

        # All math in f32 regardless of storage dtype (bf16 storage supported);
        # cast only at the final store.
        x = x_ref[...].astype(jnp.float32)        # (rep, sub, TP) sublane+lane dense
        lat = lat_ref[...].astype(jnp.float32)    # (rep, sub, TP)

        ca_mean = jnp.mean(ca_ref[...].astype(jnp.float32),
                           axis=-1, keepdims=True)          # (rep, 1, 1)

        emb = emb_ref[...].astype(jnp.float32)               # (E, 1, LD)
        if e_per_cond == 1:
            # ".repeat" path: a single embedding per condition, shared by all rows.
            emb_mean = jnp.mean(emb)                          # scalar
        else:
            # One embedding per batch row within the group (E == rep).
            emb_mean = jnp.mean(emb, axis=-1, keepdims=True)  # (rep, 1, 1)

        scale = 1.0 + 0.1 * t_ref[...].astype(jnp.float32)   # (rep, 1, 1)
        off = 0.01 * fs_ref[...].astype(jnp.float32)          # (rep, 1, 1)

        # Single full-block FMA + single unmasked full-lane-width store.
        o_ref[...] = (x * scale + lat + ca_mean + emb_mean + off).astype(o_ref.dtype)

    return kernel


def _choose_p_tile(p8, rows, itemsize, target_bytes=2 << 20):
    """Largest multiple-of-128 divisor of p8 whose block (rows x tile) fits target."""
    if p8 % 128 != 0:
        return p8  # full extent (always a legal block: equals the array dim)
    n128 = p8 // 128
    best = 128
    for d in range(1, n128 + 1):
        if n128 % d == 0:
            tp = d * 128
            if rows * tp * itemsize <= target_bytes:
                best = tp
    return best


def apply_model_pallas(x, t, c_crossattn, c_latents, img_emb, fs,
                       cond_ids=None, num_groups=None, lat_is_shared=False,
                       **_unused):
    """Synthetic stand-in for the external diffusion-UNet apply_model_func.

    `img_emb` is the raw embedding bank (num_conds, E, L, D); the per-row
    gather/repeat/concat of the original module is fused here through a
    data-dependent BlockSpec index_map driven by the scalar-prefetched cond_ids.
    """
    assert cond_ids is not None and num_groups is not None
    B = x.shape[0]
    spatial = x.shape[1:]
    P = int(np.prod(spatial))
    G = int(num_groups)
    rep = B // G
    num_conds, E = img_emb.shape[:2]
    LD = int(np.prod(img_emb.shape[2:]))
    LDc = int(np.prod(c_crossattn.shape[1:]))
    itemsize = np.dtype(x.dtype).itemsize

    # Sublane packing: (rep, P) f32 tiles use only rep/8 sublanes per vreg; fold
    # 8 rows of lanes into sublanes when P allows it.
    sub = 8 if P % (8 * 128) == 0 else 1
    P8 = P // sub
    TP = _choose_p_tile(P8, rep * sub, itemsize)   # lane tile (multiple of 128)
    NP = P8 // TP

    # Lane- and sublane-dense views (contiguous reshapes — no copies).
    x4 = x.reshape(G, rep, sub, P8)
    ca4 = c_crossattn.reshape(G, rep, 1, LDc)
    bank4 = img_emb.reshape(num_conds, E, 1, LD)

    # Per-row scalars as tiny VMEM blocks -> vectorized epilogue (no per-row stores).
    t4 = t.astype(jnp.float32).reshape(G, rep, 1, 1)
    if fs is None:
        # TODO(synk): the real UNet accepts fs=None; the synthetic combine uses 0.
        fs = jnp.zeros((B,), jnp.float32)
    fs4 = fs.astype(jnp.float32).reshape(G, rep, 1, 1)

    if lat_is_shared:
        # concat_latents was never duplicated: every group reads the same block.
        lat = c_latents.reshape(rep, sub, P8)
        lat_spec = pl.BlockSpec((rep, sub, TP), lambda g, p, cond: (0, 0, p))
    else:
        lat = c_latents.reshape(G, rep, sub, P8)
        lat_spec = pl.BlockSpec((None, rep, sub, TP), lambda g, p, cond: (g, 0, 0, p))

    # VMEM budget: blocks are sized to ~2 MiB, so the double-buffered working set
    # (x + lat + out, x2) stays well inside 64 MiB (v7x) / default scoped limits.
    big_blk = rep * sub * TP * itemsize
    vmem_budget = int(min(max(32 << 20, 8 * big_blk + (8 << 20)), 48 << 20))

    out4 = pl.pallas_call(
        _make_fused_kernel(E),
        out_shape=jax.ShapeDtypeStruct((G, rep, sub, P8), x.dtype),
        grid_spec=pltpu.PrefetchScalarGridSpec(
            num_scalar_prefetch=1,
            grid=(G, NP),
            in_specs=[
                pl.BlockSpec((None, rep, sub, TP), lambda g, p, cond: (g, 0, 0, p)),   # x
                lat_spec,                                                              # c_latents
                pl.BlockSpec((None, E, 1, LD),
                             lambda g, p, cond: (cond[g], 0, 0, 0)),                   # img_embs bank (fused gather)
                pl.BlockSpec((None, rep, 1, LDc), lambda g, p, cond: (g, 0, 0, 0)),    # c_crossattn
                pl.BlockSpec((None, rep, 1, 1), lambda g, p, cond: (g, 0, 0, 0)),      # t
                pl.BlockSpec((None, rep, 1, 1), lambda g, p, cond: (g, 0, 0, 0)),      # fs
            ],
            out_specs=pl.BlockSpec((None, rep, sub, TP), lambda g, p, cond: (g, 0, 0, p)),
        ),
        compiler_params=pltpu.CompilerParams(
            # Both axes fully parallel: group axis + P-tile axis shard across
            # v7x's two TensorCores and keep DMA/compute overlapped on 1-TC chips.
            dimension_semantics=("parallel", "parallel"),
            vmem_limit_bytes=vmem_budget,
        ),
    )(cond_ids, x4, lat, bank4, ca4, t4, fs4)

    return out4.reshape(x.shape)


# -----------------------------------------------------------------------------
# The module (JAX port).
# -----------------------------------------------------------------------------
class ModelFunctionWrapper:
    def __init__(self, concat_latents, stride, img_embs):
        # Keep the raw latents; the 2x torch.cat copy is only materialized if the
        # fused kernel cannot reuse a single shared block (saves an HBM copy).
        self._concat_latents_raw = concat_latents
        self.stride = stride
        self.img_embs = img_embs  # (num_conds, E, L, D)

    @property
    def concat_latents(self):
        # Fidelity with the torch module's attribute (materialized on demand).
        return jnp.concatenate([self._concat_latents_raw] * 2, axis=0)

    def forward(self, apply_model_func, kwargs):
        x = kwargs["input"]
        t = kwargs["timestep"]
        model_in_kwargs = dict(kwargs["c"])
        cond_list = kwargs["cond_or_uncond"]
        c_crossattn = model_in_kwargs.pop("c_crossattn")

        stride = self.stride
        if self.stride is not None:
            stride = jnp.concatenate([self.stride] * len(cond_list), axis=0)

        B = x.shape[0]
        G = len(cond_list)
        assert B % G == 0, "batch must be divisible by len(cond_or_uncond)"
        rep = B // G
        num_conds, E = self.img_embs.shape[:2]
        assert E in (1, rep), (
            f"img_embs per-cond count {E} must be 1 (repeat path) or rep={rep}")

        cond_ids = jnp.asarray([int(c) for c in cond_list], jnp.int32)

        raw = self._concat_latents_raw
        if raw.shape[0] == rep and G <= 2:
            # concat_latents[:B][g*rep + r] == raw[r] for every group g:
            # one shared (rep, ...) block — no 2x duplicate in HBM.
            c_latents, lat_is_shared = raw, True
        else:
            c_latents = jnp.concatenate([raw, raw], axis=0)[:B]
            if c_latents.shape[0] != B:
                raise ValueError(
                    f"concat_latents provides {2 * raw.shape[0]} rows but batch is "
                    f"{B}; the original torch module cannot serve this case either.")
            lat_is_shared = False

        # TODO(synk): the real apply_model_func is the external diffusion UNet and
        # would consume a densely materialized img_emb; here the gather/repeat/
        # concat is fused into the stand-in kernel via cond_ids (per perf review).
        return apply_model_func(
            x,
            t=t,
            c_crossattn=c_crossattn,
            c_latents=c_latents,
            img_emb=self.img_embs,
            fs=stride,
            cond_ids=cond_ids,
            num_groups=G,
            lat_is_shared=lat_is_shared,
            **model_in_kwargs,
        )


# -----------------------------------------------------------------------------
# Pure-JAX reference for correctness checking (f32 math on f32-upcast inputs).
# -----------------------------------------------------------------------------
def reference_forward(concat_latents_raw, stride_raw, img_embs_bank, kwargs):
    x = kwargs["input"].astype(jnp.float32)
    t = kwargs["timestep"].astype(jnp.float32)
    cond_list = kwargs["cond_or_uncond"]
    ca = kwargs["c"]["c_crossattn"].astype(jnp.float32)
    B = x.shape[0]
    rep = B // len(cond_list)

    cat_lat = jnp.concatenate([concat_latents_raw] * 2, axis=0)[:B].astype(jnp.float32)
    fs = jnp.concatenate([stride_raw] * len(cond_list), axis=0).astype(jnp.float32)

    embs = []
    for cond in cond_list:
        e = img_embs_bank[cond]  # (E, L, D)
        if e.shape[0] == 1:
            e = jnp.tile(e, (rep, 1, 1))
        embs.append(e)
    img = jnp.concatenate(embs, axis=0).astype(jnp.float32)

    emb_mean = jnp.mean(img, axis=(1, 2))[:, None, None, None]
    ca_mean = jnp.mean(ca, axis=(1, 2))[:, None, None, None]
    return (
        x * (1.0 + 0.1 * t[:, None, None, None])
        + cat_lat
        + emb_mean
        + ca_mean
        + 0.01 * fs[:, None, None, None]
    )


if __name__ == "__main__":
    key = jax.random.PRNGKey(0)
    k1, k2, k3, k4, k5 = jax.random.split(key, 5)

    # Small shapes consistent with the module's forward.
    B, C, H, W = 4, 4, 16, 16           # x: NCHW; C*H*W = 1024 -> (rep, 8, 128) tiles
    L, D = 8, 32                        # image-embedding tokens; L*D = 256
    Lc = 8                              # cross-attn tokens
    cond_list = [0, 1]                  # cond_or_uncond
    rep = B // len(cond_list)

    x = jax.random.normal(k1, (B, C, H, W), jnp.float32)
    t = jnp.linspace(0.1, 0.9, B, dtype=jnp.float32)
    c_crossattn = jax.random.normal(k2, (B, Lc, D), jnp.float32)

    concat_latents_raw = jax.random.normal(k3, (rep, C, H, W), jnp.float32)
    stride_raw = jnp.full((rep,), 10.0, jnp.float32)

    kwargs = {
        "input": x,
        "timestep": t,
        "c": {"c_crossattn": c_crossattn},
        "cond_or_uncond": cond_list,
    }

    # --- Case 1: E == 1 (the ".repeat" path of the original module), f32 -----
    bank_e1 = jax.random.normal(k4, (len(cond_list), 1, L, D), jnp.float32)
    wrapper = ModelFunctionWrapper(concat_latents_raw, stride_raw, bank_e1)
    out = jax.block_until_ready(wrapper.forward(apply_model_pallas, kwargs))
    ref = reference_forward(concat_latents_raw, stride_raw, bank_e1, kwargs)
    np.testing.assert_allclose(np.asarray(out), np.asarray(ref), rtol=1e-5, atol=1e-5)

    # --- Case 2: E == rep (per-row embeddings, no repeat), f32 ---------------
    bank_er = jax.random.normal(k5, (len(cond_list), rep, L, D), jnp.float32)
    wrapper2 = ModelFunctionWrapper(concat_latents_raw, stride_raw, bank_er)
    out2 = jax.block_until_ready(wrapper2.forward(apply_model_pallas, kwargs))
    ref2 = reference_forward(concat_latents_raw, stride_raw, bank_er, kwargs)
    np.testing.assert_allclose(np.asarray(out2), np.asarray(ref2), rtol=1e-5, atol=1e-5)

    # --- Case 3: bf16 storage (half HBM traffic), f32 in-kernel accumulation --
    x_bf = x.astype(jnp.bfloat16)
    ca_bf = c_crossattn.astype(jnp.bfloat16)
    lat_bf = concat_latents_raw.astype(jnp.bfloat16)
    bank_bf = bank_e1.astype(jnp.bfloat16)
    kwargs_bf = {
        "input": x_bf,
        "timestep": t,
        "c": {"c_crossattn": ca_bf},
        "cond_or_uncond": cond_list,
    }
    wrapper3 = ModelFunctionWrapper(lat_bf, stride_raw, bank_bf)
    out3 = jax.block_until_ready(wrapper3.forward(apply_model_pallas, kwargs_bf))
    ref3 = reference_forward(lat_bf, stride_raw, bank_bf, kwargs_bf)
    np.testing.assert_allclose(np.asarray(out3, dtype=np.float32),
                               np.asarray(ref3), rtol=3e-2, atol=3e-2)

    print("KERNEL_OK")
</pallas_src>

<mosaic_0001>
module attributes {stable_mosaic.version = 11 : i64} {
  func.func @kernel(%arg0: i32, %arg1: i32, %arg2: memref<2xi32, #tpu.memory_space<smem>>, %arg3: memref<1x2x8x128xf32, #tpu.memory_space<vmem>>, %arg4: memref<2x8x128xf32, #tpu.memory_space<vmem>>, %arg5: memref<1x1x1x256xf32, #tpu.memory_space<vmem>>, %arg6: memref<1x2x1x256xf32, #tpu.memory_space<vmem>>, %arg7: memref<1x2x1x1xf32, #tpu.memory_space<vmem>>, %arg8: memref<1x2x1x1xf32, #tpu.memory_space<vmem>>, %arg9: memref<1x2x8x128xf32, #tpu.memory_space<vmem>>) attributes {dimension_semantics = [#tpu.dimension_semantics<parallel>, #tpu.dimension_semantics<parallel>], iteration_bounds = array<i64: 2, 1>, scalar_prefetch = 1 : i64, scratch_operands = 0 : i64, tpu.core_type = #tpu.core_type<tc>, window_params = [{transform_indices = @transform_0, window_bounds = array<i64: 1, 2, 8, 128>}, {transform_indices = @transform_1, window_bounds = array<i64: 2, 8, 128>}, {transform_indices = @transform_2, window_bounds = array<i64: 1, 1, 1, 256>}, {transform_indices = @transform_3, window_bounds = array<i64: 1, 2, 1, 256>}, {transform_indices = @transform_4, window_bounds = array<i64: 1, 2, 1, 1>}, {transform_indices = @transform_5, window_bounds = array<i64: 1, 2, 1, 1>}, {transform_indices = @transform_6, window_bounds = array<i64: 1, 2, 8, 128>}]} {
    %c0 = arith.constant 0 : index
    %c0_0 = arith.constant 0 : index
    %c0_1 = arith.constant 0 : index
    %c0_2 = arith.constant 0 : index
    %0 = vector.load %arg3[%c0, %c0_0, %c0_1, %c0_2] : memref<1x2x8x128xf32, #tpu.memory_space<vmem>>, vector<1x2x8x128xf32>
    %1 = vector.shape_cast %0 : vector<1x2x8x128xf32> to vector<2x8x128xf32>
    %c0_3 = arith.constant 0 : index
    %c0_4 = arith.constant 0 : index
    %c0_5 = arith.constant 0 : index
    %2 = vector.load %arg4[%c0_3, %c0_4, %c0_5] : memref<2x8x128xf32, #tpu.memory_space<vmem>>, vector<2x8x128xf32>
    %c0_6 = arith.constant 0 : index
    %c0_7 = arith.constant 0 : index
    %c0_8 = arith.constant 0 : index
    %c0_9 = arith.constant 0 : index
    %3 = vector.load %arg6[%c0_6, %c0_7, %c0_8, %c0_9] : memref<1x2x1x256xf32, #tpu.memory_space<vmem>>, vector<1x2x1x256xf32>
    %4 = vector.shape_cast %3 : vector<1x2x1x256xf32> to vector<2x1x256xf32>
    %cst = arith.constant dense<0.000000e+00> : vector<2x1xf32>
    %5 = vector.multi_reduction <add>, %4, %cst [2] : vector<2x1x256xf32> to vector<2x1xf32>
    %6 = vector.shape_cast %5 : vector<2x1xf32> to vector<2x1x1xf32>
    %cst_10 = arith.constant 2.560000e+02 : f32
    %7 = vector.broadcast %cst_10 : f32 to vector<2x1x1xf32>
    %8 = arith.divf %6, %7 : vector<2x1x1xf32>
    %c0_11 = arith.constant 0 : index
    %c0_12 = arith.constant 0 : index
    %c0_13 = arith.constant 0 : index
    %c0_14 = arith.constant 0 : index
    %9 = vector.load %arg5[%c0_11, %c0_12, %c0_13, %c0_14] : memref<1x1x1x256xf32, #tpu.memory_space<vmem>>, vector<1x1x1x256xf32>
    %10 = vector.shape_cast %9 : vector<1x1x1x256xf32> to vector<1x1x256xf32>
    %11 = vector.shape_cast %10 : vector<1x1x256xf32> to vector<1x1x1x256xf32>
    %cst_15 = arith.constant dense<0.000000e+00> : vector<1xf32>
    %12 = vector.multi_reduction <add>, %11, %cst_15 [1, 2, 3] : vector<1x1x1x256xf32> to vector<1xf32>
    %13 = vector.shape_cast %12 : vector<1xf32> to vector<1x1x1x1xf32>
    %14 = vector.extract %13[0, 0, 0, 0] : f32 from vector<1x1x1x1xf32>
    %cst_16 = arith.constant 2.560000e+02 : f32
    %15 = arith.divf %14, %cst_16 : f32
    %c0_17 = arith.constant 0 : index
    %c0_18 = arith.constant 0 : index
    %c0_19 = arith.constant 0 : index
    %c0_20 = arith.constant 0 : index
    %16 = vector.load %arg7[%c0_17, %c0_18, %c0_19, %c0_20] : memref<1x2x1x1xf32, #tpu.memory_space<vmem>>, vector<1x2x1x1xf32>
    %17 = vector.shape_cast %16 : vector<1x2x1x1xf32> to vector<2x1x1xf32>
    %cst_21 = arith.constant 1.000000e-01 : f32
    %18 = vector.broadcast %cst_21 : f32 to vector<2x1x1xf32>
    %19 = arith.mulf %18, %17 : vector<2x1x1xf32>
    %cst_22 = arith.constant 1.000000e+00 : f32
    %20 = vector.broadcast %cst_22 : f32 to vector<2x1x1xf32>
    %21 = arith.addf %20, %19 : vector<2x1x1xf32>
    %c0_23 = arith.constant 0 : index
    %c0_24 = arith.constant 0 : index
    %c0_25 = arith.constant 0 : index
    %c0_26 = arith.constant 0 : index
    %22 = vector.load %arg8[%c0_23, %c0_24, %c0_25, %c0_26] : memref<1x2x1x1xf32, #tpu.memory_space<vmem>>, vector<1x2x1x1xf32>
    %23 = vector.shape_cast %22 : vector<1x2x1x1xf32> to vector<2x1x1xf32>
    %cst_27 = arith.constant 0.00999999977 : f32
    %24 = vector.broadcast %cst_27 : f32 to vector<2x1x1xf32>
    %25 = arith.mulf %24, %23 : vector<2x1x1xf32>
    %26 = vector.broadcast %21 : vector<2x1x1xf32> to vector<2x8x128xf32>
    %27 = arith.mulf %1, %26 : vector<2x8x128xf32>
    %28 = arith.addf %27, %2 : vector<2x8x128xf32>
    %29 = vector.broadcast %8 : vector<2x1x1xf32> to vector<2x8x128xf32>
    %30 = arith.addf %28, %29 : vector<2x8x128xf32>
    %31 = vector.broadcast %15 : f32 to vector<2x8x128xf32>
    %32 = arith.addf %30, %31 : vector<2x8x128xf32>
    %33 = vector.broadcast %25 : vector<2x1x1xf32> to vector<2x8x128xf32>
    %34 = arith.addf %32, %33 : vector<2x8x128xf32>
    %c0_28 = arith.constant 0 : index
    %c0_29 = arith.constant 0 : index
    %c0_30 = arith.constant 0 : index
    %c0_31 = arith.constant 0 : index
    %35 = vector.load %arg9[%c0_28, %c0_29, %c0_30, %c0_31] : memref<1x2x8x128xf32, #tpu.memory_space<vmem>>, vector<1x2x8x128xf32>
    %36 = vector.shape_cast %35 : vector<1x2x8x128xf32> to vector<2x8x128xf32>
    %37 = vector.shape_cast %34 : vector<2x8x128xf32> to vector<1x2x8x128xf32>
    tpu.vector_store %arg9[%c0_28, %c0_29, %c0_30, %c0_31], %37 {strides = array<i32>} : memref<1x2x8x128xf32, #tpu.memory_space<vmem>>, vector<1x2x8x128xf32>,
    return
  }
  func.func @transform_0(%arg0: i32, %arg1: i32, %arg2: memref<2xi32, #tpu.memory_space<smem>>) -> (i32, i32, i32, i32) {
    %c0_i32 = arith.constant 0 : i32
    %c0_i32_0 = arith.constant 0 : i32
    %c0_i32_1 = arith.constant 0 : i32
    return %arg0, %c0_i32, %c0_i32_0, %arg1 : i32, i32, i32, i32
  }
  func.func @transform_1(%arg0: i32, %arg1: i32, %arg2: memref<2xi32, #tpu.memory_space<smem>>) -> (i32, i32, i32) {
    %c0_i32 = arith.constant 0 : i32
    %c0_i32_0 = arith.constant 0 : i32
    %c0_i32_1 = arith.constant 0 : i32
    return %c0_i32, %c0_i32_0, %arg1 : i32, i32, i32
  }
  func.func @transform_2(%arg0: i32, %arg1: i32, %arg2: memref<2xi32, #tpu.memory_space<smem>>) -> (i32, i32, i32, i32) {
    %0 = arith.index_cast %arg0 : i32 to index
    %1 = memref.load %arg2[%0] : memref<2xi32, #tpu.memory_space<smem>>
    %c0_i32 = arith.constant 0 : i32
    %c0_i32_0 = arith.constant 0 : i32
    %c0_i32_1 = arith.constant 0 : i32
    %c0_i32_2 = arith.constant 0 : i32
    return %1, %c0_i32, %c0_i32_0, %c0_i32_1 : i32, i32, i32, i32
  }
  func.func @transform_3(%arg0: i32, %arg1: i32, %arg2: memref<2xi32, #tpu.memory_space<smem>>) -> (i32, i32, i32, i32) {
    %c0_i32 = arith.constant 0 : i32
    %c0_i32_0 = arith.constant 0 : i32
    %c0_i32_1 = arith.constant 0 : i32
    %c0_i32_2 = arith.constant 0 : i32
    return %arg0, %c0_i32, %c0_i32_0, %c0_i32_1 : i32, i32, i32, i32
  }
  func.func @transform_4(%arg0: i32, %arg1: i32, %arg2: memref<2xi32, #tpu.memory_space<smem>>) -> (i32, i32, i32, i32) {
    %c0_i32 = arith.constant 0 : i32
    %c0_i32_0 = arith.constant 0 : i32
    %c0_i32_1 = arith.constant 0 : i32
    %c0_i32_2 = arith.constant 0 : i32
    return %arg0, %c0_i32, %c0_i32_0, %c0_i32_1 : i32, i32, i32, i32
  }
  func.func @transform_5(%arg0: i32, %arg1: i32, %arg2: memref<2xi32, #tpu.memory_space<smem>>) -> (i32, i32, i32, i32) {
    %c0_i32 = arith.constant 0 : i32
    %c0_i32_0 = arith.constant 0 : i32
    %c0_i32_1 = arith.constant 0 : i32
    %c0_i32_2 = arith.constant 0 : i32
    return %arg0, %c0_i32, %c0_i32_0, %c0_i32_1 : i32, i32, i32, i32
  }
  func.func @transform_6(%arg0: i32, %arg1: i32, %arg2: memref<2xi32, #tpu.memory_space<smem>>) -> (i32, i32, i32, i32) {
    %c0_i32 = arith.constant 0 : i32
    %c0_i32_0 = arith.constant 0 : i32
    %c0_i32_1 = arith.constant 0 : i32
    return %arg0, %c0_i32, %c0_i32_0, %arg1 : i32, i32, i32, i32
  }
}

</mosaic_0001>

<bundles_post_ra>
// kernel: tpu_custom_call.1
= control target key start
LH: loop header
LB: loop body
LE: loop exit
PB: predicated region body
PF: predicated region fallthrough
CT: control target
= control target key end

     0   :  { %s1414_s0 = inlined_call_operand.vmem [shape: s32[2], index: 0, kind: input, shape index: {}]   ;;  %s1415_s1 = inlined_call_operand.hbm [shape: f32[2,2,8,128], index: 1, kind: input, shape index: {}]   ;;  %s1416_s2 = inlined_call_operand.vmem [shape: f32[2,8,128], index: 2, kind: input, shape index: {}]   ;;  %s1417_s3 = inlined_call_operand.hbm [shape: f32[2,1,1,256], index: 3, kind: input, shape index: {}]   ;;  %s1418_s4 = inlined_call_operand.vmem [shape: f32[2,2,1,256], index: 4, kind: input, shape index: {}]   ;;  %s1419_s5 = inlined_call_operand.vmem [shape: f32[2,2,1,1], index: 5, kind: input, shape index: {}]   ;;  %s1420_s6 = inlined_call_operand.vmem [shape: f32[2,2,1,1], index: 6, kind: input, shape index: {}]   ;;  %s1421_s7 = inlined_call_operand.hbm [shape: f32[2,2,8,128], index: 7, kind: output, shape index: {}]  }
   0x1   :  { %1433 = sst [smem:[#allocation21_spill]] %s1415_s1  ;;  %s12_s26 = sshll.u32 %s1414_s0, 4  ;;  %s13_s26 = int_to_ptr.vmem [resolvable:$true] %s12_s26 }
   0x2   :  { %s845_s27 = scalar_lea.vmem %s13_s26, 16  ;;  %p850_p1 = scmp.lt.s32.totalorder %s13_s26, %s13_s26 }
   0x3   :  { %p846_p0 = scmp.ne.s32.totalorder %s13_s26, %s845_s27  ;;  %p851_p2 = scmp.lt.s32.totalorder %s845_s27, %s845_s27 }
   0x5   :  { %p852_p3 = por %p851_p2, %p850_p1 }
   0x7   :  { %p853_p4 = pnand %p852_p3, %p846_p0 }
   0x9   :  { %856 = shalt.err (!%p853_p4)  }
   0xa   :  { %s1031_s28 = smov [#allocation3]  }
   0xb   :  { %15 = dma.vmem_to_smem %s13_s26, 16, %s1031_s28, [#allocation2] }
   0xc   :  { %981 = dma.done.wait [#allocation2], 16 }
   0xd   :  { %982 = vsyncadd [#allocation2], 4294967280 }
   0xe   :  { %17 = sfence }
   0xf   :  { %18 = vsyncpa [#allocation5], 0 }
  0x10   :  { %20 = vsyncpa [#allocation5 + $0x1], 0 }
  0x11   :  { %21 = vsyncpa [#allocation8], 0 }
  0x12   :  { %23 = vsyncpa [#allocation8 + $0x1], 0 }
  0x13   :  { %24 = vsyncpa [#allocation6], 0 }
  0x14   :  { %26 = vsyncpa [#allocation6 + $0x1], 0  ;;  %s1083_s0 = smov 0   ;;  %s1085_s29 = smov 0  }
  0x15   :  { %s1087_s30 = smov 0   ;;  %s1089_s8 = smov 0  }
  0x16   :  { %s1091_s9 = smov 0   ;;  %s1093_s10 = smov 0  }
  0x17   :  { %s1095_s11 = smov 0   ;;  %s1097_s12 = smov 0  }
  0x18   :  { %s1099_s13 = smov 0  }
  0x19 LB: > { %1434 = sst [smem:[#allocation16_spill]] %s1017_s10  ;;  %s1422_s14 = sadd.s32 4294967295, %s1029_s13   ;;  %s1029_s13 = sphi %s1099_s13, %s32_s13   ;;  %s1025_s12 = sphi %s1097_s12, %s1464_s12   ;;  %s1021_s11 = sphi %s1095_s11, %s1463_s11   ;;  %s1017_s10 = sphi %s1093_s10, %s1462_s10   ;;  %s1013_s9 = sphi %s1091_s9, %s1469_s9   ;;  %s1009_s8 = sphi %s1089_s8, %s1468_s8   ;;  %s1005_s30 = sphi %s1087_s30, %s1467_s30   ;;  %s1001_s29 = sphi %s1085_s29, %s1466_s29   ;;  %s997_s0 = sphi %s1083_s0, %s1465_s0  }
  0x1a   : > { %1435 = sst [smem:[#allocation17_spill]] %s1025_s12  ;;  %s715_s15 = sadd.s32 4294967294, %s1029_s13  }
  0x1b   : > { %s44_s16 = sadd.s32 1, %s1025_s12  ;;  %s53_s17 = sadd.s32 1, %s1017_s10 }
  0x1c   : > { %p46_p5 = scmp.ge.s32.totalorder %s44_s16, 2  ;;  %p60_p6 = scmp.ne.s32.totalorder %s1017_s10, %s1013_s9 }
  0x1d   : > { %p1424_p7 = scmp.eq.s32.totalorder %s1029_s13, 0  ;;  %p1425_p8 = scmp.ne.s32.totalorder %s1013_s9, %s1009_s8 }
  0x1e   : > { %s1471_s16 = smov (%p46_p5, %s44_s16), 0  ;;  %s1146_s19 = sld [smem:[#allocation3 + %s1025_s12]] }
  0x1f   : > { %1436 = sst [smem:[#allocation18_spill]] %s1471_s16  ;;  %p1141_p9 = por %p1424_p7, %p60_p6 }
  0x20   : > { %s48_s20 = ssub.s32 %s1025_s12, %s1471_s16  ;;  %p224_p10 = scmp.eq.s32.totalorder %s1422_s14, 1 }
  0x21   : > { %p51_p11 = scmp.eq.s32.totalorder %s48_s20, 0  ;;  %p230_p12 = scmp.eq.s32.totalorder %s715_s15, 1 }
  0x22   : > { %p1152_p13 = por %p224_p10, %p60_p6  ;;  %p1423_p2 = scmp.lt.s32.totalorder %s1029_s13, 2 }
  0x23   : > { %s1158_s22 = scalar_select %p51_p11, %s1017_s10, %s53_s17  }
  0x24   : > { %s1438_s21 = scalar_select %p1152_p13, 1, 0 }
  0x25   : > { %1439 = sst [smem:[#allocation19_spill]] %s1158_s22  ;;  %p1163_p1 = por %p230_p12, %p1425_p8 }
  0x26   : > { %s257_s24 = sand.u32 1, %s1017_s10   ;;  %s737_s25 = sshll.u32 %s1025_s12, 8 }
  0x27   : > { %s1440_s23 = scalar_select %p1163_p1, 1, 0 }
  0x28   : > { %s719_s26 = sshll.u32 %s257_s24, 4  ;;  %s1442_s1 = sld [smem:[#allocation21_spill]] }
  0x29   : > { %1441 = sst [smem:[#allocation20_spill]] %s1440_s23  ;;  %s261_s17 = scalar_lea.vmem [#allocation4], %s719_s26 }
  0x2a   : > { %s269_s20 = sshll.u32 %s261_s17, 4  ;;  %p1179_p3 = pnand %p1423_p2, %p1141_p9  ;;  %s1183_s20 = int_to_ptr.vmem [resolvable:$true] %s269_s20 }
  0x2b   : > { %s1185_s22 = scalar_lea.sflag [#allocation5], %s257_s24 }
  0x2c   : > { %p859_p5 = pneg %p1179_p3 }
  0x2e   : > { %s1173_s15 = scalar_lea.hbm %s1442_s1, %s737_s25  ;;  %s862_s27 = scalar_lea.hbm %s1442_s1, 512 }
  0x2f   : > { %s857_s25 = scalar_lea.hbm %s1173_s15, 256  ;;  %p863_p9 = scmp.lt.u32.totalorder %s1173_s15, %s1442_s1 }
  0x30   : > { %p858_p4 = scmp.ne.s32.totalorder %s1173_s15, %s857_s25  ;;  %p864_p11 = scmp.lt.u32.totalorder %s862_s27, %s857_s25 }
  0x31   : > { %p866_p0 = scmp.lt.u32.totalorder %s857_s25, %s1173_s15 }
  0x32   : > { %p860_p6 = pnand %p859_p5, %p858_p4  ;;  %p865_p12 = por %p864_p11, %p863_p9 }
  0x34   : > { %p861_p10 = pneg %p860_p6  ;;  %p867_p2 = por %p866_p0, %p865_p12 }
  0x36   : > { %p868_p7 = pnand %p867_p2, %p861_p10 }
  0x38   : > { %871 = shalt.err (!%p868_p7)
}
  0x39   : > { %s872_s24 = scalar_lea.vmem %s1183_s20, 256  ;;  %s1032_s18 = smov [#allocation4]  }
  0x3a   : > { %p873_p4 = scmp.ne.s32.totalorder %s1183_s20, %s872_s24  ;;  %s877_s26 = sshll.u32 %s1032_s18, 4  ;;  %s878_s26 = int_to_ptr.vmem [resolvable:$false] %s877_s26 }
  0x3b   : > { %s879_s28 = scalar_lea.vmem %s878_s26, 512  ;;  %p880_p1 = scmp.lt.s32.totalorder %s1183_s20, %s878_s26 }
  0x3c   : > { %p875_p6 = pnand %p873_p4, %p859_p5  ;;  %p881_p9 = scmp.lt.s32.totalorder %s879_s28, %s872_s24 }
  0x3e   : > { %p876_p8 = pneg %p875_p6  ;;  %p882_p11 = por %p881_p9, %p880_p1 }
  0x40   : > { %p883_p0 = pnand %p882_p11, %p876_p8 }
  0x42   : > { %886 = shalt.err (!%p883_p0)
}
  0x43   : > { %s1033_s25 = smov 128   ;;  %s1034_s27 = smov 8  }
  0x44   : > { %753 = dma.hbm_to_vmem [thread:$0]  (!%p1179_p3), %s1173_s15, 256, %s1183_s20, %s1185_s22, %s1033_s25, %s1033_s25, %s1034_s27  }
  0x45   : > { %p725_p7 = scmp.ge.s32.totalorder %s1029_s13, 1  ;;  %p318_p8 = scmp.lt.s32.totalorder %s1029_s13, 3 }
  0x46   : > { %s1445_s24 = sadd.s32 4294967295, %s1029_s13   ;;  %s103_s18 = sld [smem:[#allocation3 + %s1471_s16]] }
  0x47   : > { %p1215_p1 = pnand %p725_p7, %p318_p8  ;;  %p67_p2 = scmp.eq.s32.totalorder %s1445_s24, 0 }
  0x48   : > { %p1446_p5 = scmp.ne.s32.totalorder %s1013_s9, %s1009_s8  ;;  %p114_p3 = scmp.ne.s32.totalorder %s1005_s30, %s1001_s29 }
  0x49   : > { %p120_p12 = scmp.ne.s32.totalorder %s1001_s29, %s997_s0  ;;  %s279_s14 = sand.u32 1, %s1005_s30  }
  0x4a   : > { %p1225_p10 = por %p67_p2, %p1446_p5  ;;  %p1448_p4 = scmp.eq.s32.totalorder %s1029_s13, 0 }
  0x4b   : > { %p1236_p9 = por %p120_p12, %p67_p2  ;;  %s107_s15 = sadd.s32 1, %s1005_s30 }
  0x4c   : > { %s1447_s26 = scalar_select %p1225_p10, 1, 0 }
  0x4d   : > { %p116_p6 = por %p114_p3, %p1448_p4  ;;  %s104_s20 = ssub.s32 %s1146_s19, %s103_s18 }
  0x4e   : > { %s1449_s22 = scalar_select %p1236_p9, 1, 0 }
  0x4f   : > { %s722_s28 = sshll.u32 %s279_s14, 1  ;;  %p105_p11 = scmp.eq.s32.totalorder %s104_s20, 0 }
  0x50   : > { %p1450_p0 = scmp.lt.s32.totalorder %s1029_s13, 2  ;;  %s283_s16 = scalar_lea.vmem [#allocation7], %s722_s28 }
  0x51   : > { %s743_s27 = scalar_select %p116_p6, [#allocation3], [#allocation10] }
  0x52   : > { %p1244_p7 = pnand %p1450_p0, %p116_p6  ;;  %p1452_p8 = pmov %p1450_p0 }
  0x53   : > { %s1249_s0 = scalar_select %p105_p11, %s1005_s30, %s107_s15  }
  0x54   : > { %s744_s24 = scalar_select %p116_p6, %s1025_s12, 0 }
  0x55   : > { %s1473_s27 = smov (!%p1452_p8, %s743_s27), [#allocation11]  ;;  %p1453_p2 = pmov %p1450_p0 }
  0x56   : > { %s292_s19 = sshll.u32 %s283_s16, 4  ;;  %s280_s15 = scalar_lea.sflag [#allocation8], %s279_s14  ;;  %s1256_s19 = int_to_ptr.vmem [resolvable:$true] %s292_s19 }
  0x57   : > { %s1475_s24 = smov (!%p1453_p2, %s744_s24), 0  ;;  %p889_p3 = pneg %p1244_p7 }
  0x58   : > { %s284_s1 = sld [smem:[%s1473_s27 + %s1475_s24]]  ;;  %s892_s28 = scalar_lea.hbm %s1417_s3, 64 }
  0x5e   : > { %s738_s18 = sshll.u32 %s284_s1, 5 }
  0x5f   : > { %s1261_s23 = scalar_lea.hbm %s1417_s3, %s738_s18 }
  0x60   : > { %s887_s12 = scalar_lea.hbm %s1261_s23, 32  ;;  %p893_p6 = scmp.lt.u32.totalorder %s1261_s23, %s1417_s3 }
  0x61   : > { %p888_p5 = scmp.ne.s32.totalorder %s1261_s23, %s887_s12  ;;  %p894_p11 = scmp.lt.u32.totalorder %s892_s28, %s887_s12 }
  0x62   : > { %p896_p8 = scmp.lt.u32.totalorder %s887_s12, %s1261_s23 }
  0x63   : > { %p890_p12 = pnand %p889_p3, %p888_p5  ;;  %p895_p0 = por %p894_p11, %p893_p6 }
  0x65   : > { %p891_p4 = pneg %p890_p12  ;;  %p897_p2 = por %p896_p8, %p895_p0 }
  0x67   : > { %p898_p13 = pnand %p897_p2, %p891_p4 }
  0x69   : > { %901 = shalt.err (!%p898_p13)
}
  0x6a   : > { %s902_s14 = scalar_lea.vmem %s1256_s19, 32  ;;  %s1035_s24 = smov [#allocation7]  }
  0x6b   : > { %p903_p5 = scmp.ne.s32.totalorder %s1256_s19, %s902_s14  ;;  %s907_s18 = sshll.u32 %s1035_s24, 4  ;;  %s908_s18 = int_to_ptr.vmem [resolvable:$false] %s907_s18 }
  0x6c   : > { %s909_s20 = scalar_lea.vmem %s908_s18, 64  ;;  %p910_p10 = scmp.lt.s32.totalorder %s1256_s19, %s908_s18 }
  0x6d   : > { %p905_p12 = pnand %p903_p5, %p889_p3  ;;  %p911_p6 = scmp.lt.s32.totalorder %s909_s20, %s902_s14 }
  0x6f   : > { %p906_p9 = pneg %p905_p12  ;;  %p912_p11 = por %p911_p6, %p910_p10 }
  0x71   : > { %p913_p0 = pnand %p912_p11, %p906_p9 }
  0x73   : > { %916 = shalt.err (!%p913_p0)
}
  0x74   : > { %758 = dma.hbm_to_vmem [thread:$0]  (!%p1244_p7), %s1261_s23, 32, %s1256_s19, %s280_s15  }
  0x75   : > { %322 = sbr.rel (%p1215_p1) target bundleno = 366 (0x16e), region = 44  ;;  %s1291_s12 = sand.u32 (!%p1215_p1), 1, %s1013_s9  }
  0x76   : > { %s726_s16 = sshll.u32 (!%p1215_p1), %s1291_s12, 4  ;;  %s325_s1 = scalar_lea.sflag (!%p1215_p1), [#allocation5], %s1291_s12 }
  0x77   : > { %s1297_s28 = scalar_lea.vmem (!%p1215_p1), [#allocation4], %s726_s16  ;;  %p1454_p13 = scmp.ne.s32.totalorder (!%p1215_p1), %s1447_s26, 0 }
  0x7c   : > { %984 = dma.done.wait (%p1454_p13), %s325_s1, 256  }
  0x7d   : > { %986 = vsyncadd (%p1454_p13), %s325_s1, 4294967040  ;;  %s333_s23 = sand.u32 1, %s1001_s29   ;;  %p1455_p1 = scmp.ne.s32.totalorder %s1449_s22, 0 }
  0x7e   : > { %s727_s17 = sshll.u32 %s333_s23, 1  ;;  %s334_s25 = scalar_lea.sflag [#allocation8], %s333_s23 }
  0x7f   : > { %s337_s19 = scalar_lea.vmem [#allocation7], %s727_s17 }
  0x80   : > { %988 = dma.done.wait (%p1455_p1), %s334_s25, 32  }
  0x81   : > { %990 = vsyncadd (%p1455_p1), %s334_s25, 4294967264  ;;  %v412_v0 = vlaneseq  ;;  %p392_p10 = scmp.lt.s32.totalorder %s1021_s11, 1  ;;  %v1036_v1 = vmov 0   ;;  %vm432_vm0 = vcmask 1040384   ;;  %v446_v5 = vld [vmem:[%s337_s19] sm:$0x3] }
  0x82   : > { %843 = vset.pattern.permute.xlu1 %v1036_v1  ;;  %844 = vset.pattern.permute.xlu0 %v1036_v1  ;;  %v404_v47 = vld [vmem:[%s1297_s28] sm:$0xff]  ;;  %v405_v49 = vld [vmem:[%s1297_s28 + $0x8] sm:$0xff]  ;;  %s386_s27 = scalar_lea.vmem [#allocation9], %s726_s16  ;;  %s541_s16 = scalar_lea.sflag [#allocation6], %s1291_s12 }
  0x83   : > { %v413_v2 = vshrl.u32 %v412_v0, 7  ;;  %s1310_s26 = scalar_select %p392_p10, %s1021_s11, 1  ;;  %v406_v54 = vld [vmem:[%s1416_s2] sm:$0xff]  ;;  %v407_v55 = vld [vmem:[%s1416_s2 + $0x8] sm:$0xff] }
  0x84   : > { %p1456_p7 = scmp.ne.s32.totalorder %s1438_s21, 0  ;;  %s1037_s1 = smov [#allocation9]  }
  0x85   : > { %v1312_v3 = vsub.s32 0, %v413_v2  ;;  %v418_v4 = vsub.s32 1, %v413_v2  ;;  %s729_s15 = sshll.u32 %s1310_s26, 2  ;;  %s730_s14 = sshll.u32 %s1310_s26, 1 }
  0x86   : > { %s395_s22 = scalar_lea.vmem %s1418_s4, %s729_s15  ;;  %s399_s20 = scalar_lea.vmem %s1419_s5, %s730_s14 }
  0x87   : > { %v409_v6 = vld [vmem:[%s395_s22 + $0x2] sm:$0x3]  ;;  %v408_v7 = vld [vmem:[%s395_s22] sm:$0x3]  ;;  %v451_v8 = vrot.slane %v446_v5, %v1312_v3  ;;  %v455_v9 = vrot.slane %v446_v5, %v418_v4  ;;  %s403_s17 = scalar_lea.vmem %s1420_s6, %s730_s14  ;;  %s555_s22 = sshll.u32 %s386_s27, 4  ;;  %s1351_s22 = int_to_ptr.vmem [resolvable:$true] %s555_s22 }
  0x88   : > { %v423_v10 = vrot.slane %v409_v6, %v1312_v3  ;;  %v427_v11 = vrot.slane %v409_v6, %v418_v4  ;;  %v415_v12 = vrot.slane %v408_v7, %v1312_v3  ;;  %v419_v13 = vrot.slane %v408_v7, %v418_v4  ;;  %v473_v23 = vld [vmem:[%s399_s20] sm:$0x1]  ;;  %v474_v27 = vld [vmem:[%s399_s20 + $0x1] sm:$0x1]  ;;  %s739_s14 = sshll.u32 %s1021_s11, 8  ;;  %s917_s11 = scalar_lea.vmem %s1351_s22, 256 }
  0x89   : > { %v458_v14 = vsel %vm432_vm0, %v451_v8, 0.0  ;;  %v459_v15 = vsel %vm432_vm0, %v455_v9, 0.0  ;;  %v475_v24 = vmul.f32 0.1, %v473_v23  ;;  %v479_v26 = vld [vmem:[%s403_s17] sm:$0x1]  ;;  %s1356_s20 = scalar_lea.hbm %s1421_s7, %s739_s14  ;;  %p918_p9 = scmp.ne.s32.totalorder %s1351_s22, %s917_s11 }
  0x8a   : > { %v438_v16 = vsel %vm432_vm0, %v423_v10, 0.0  ;;  %v439_v17 = vsel %vm432_vm0, %v427_v11, 0.0  ;;  %v460_v18 = vadd.f32 %v459_v15, %v458_v14  ;;  %v433_v20 = vsel %vm432_vm0, %v415_v12, 0.0  ;;  %v480_v31 = vld [vmem:[%s403_s17 + $0x1] sm:$0x1]  ;;  %s921_s23 = sshll.u32 %s1037_s1, 4  ;;  %s922_s23 = int_to_ptr.vmem [resolvable:$false] %s921_s23 }
  0x8b   : > { %v440_v19 = vadd.f32 %v439_v17, %v438_v16  ;;  %v434_v21 = vsel %vm432_vm0, %v419_v13, 0.0  ;;  %v477_v25 = vadd.f32 1.0, %v475_v24  ;;  %v481_v29 = vmul.f32 0.01, %v479_v26  ;;  %p919_p3 = pnand %p918_p9, %p1456_p7  ;;  %s923_s17 = scalar_lea.vmem %s922_s23, 512 }
  0x8c   : > { %461 = vadd.xlane.f32.xlu0 %v460_v18  ;;  %v435_v22 = vadd.f32 %v434_v21, %v433_v20  ;;  %v476_v30 = vmul.f32 0.1, %v474_v27  ;;  %v482_v33 = vmul.f32 0.01, %v480_v31  ;;  %p924_p8 = scmp.lt.s32.totalorder %s1351_s22, %s922_s23  ;;  %p925_p2 = scmp.lt.s32.totalorder %s923_s17, %s917_s11 }
  0x8d   : > { %441 = vadd.xlane.f32.xlu1 %v440_v19  ;;  %v488_v28 = vrot.slane %v477_v25, %v1312_v3  ;;  %v523_v32 = vrot.slane %v481_v29, %v1312_v3  ;;  %p920_p4 = pneg %p919_p3 }
  0x8e   : > { %v478_v34 = vadd.f32 1.0, %v476_v30  ;;  %v527_v35 = vrot.slane %v482_v33, %v1312_v3  ;;  %p926_p5 = por %p925_p2, %p924_p8 }
  0x90   : > { %436 = vadd.xlane.f32.xlu0 %v435_v22  ;;  %v492_v36 = vrot.slane %v478_v34, %v1312_v3  ;;  %p927_p12 = pnand %p926_p5, %p920_p4 }
  0x9e   : > { %494 = vperm.xlu1 %843, %v488_v28  }
  0xa2   : > { %529 = vperm.xlu1 %843, %v523_v32  }
  0xa6   : > { %533 = vperm.xlu1 %843, %v527_v35   ;;  %498 = vperm.xlu0 %844, %v492_v36  }
 0x119   : > { %v462_v37 = vpop.xlane.xlu0 %461 }
 0x11a   : > { %v463_v38 = vrot.slane %v462_v37, 4  ;;  %v442_v44 = vpop.xlane.xlu1 %441 }
 0x11b   : > { %v445_v50 = vmul.f32 0.00390625, %v442_v44 }
 0x11c   : > { %v464_v39 = vadd.f32 %v463_v38, %v462_v37 }
 0x11d   : > { %v437_v45 = vpop.xlane.xlu0 %436  ;;  %v512_v56 = vrot.slane %v445_v50, %v1312_v3 }
 0x11e   : > { %v465_v40 = vrot.slane %v464_v39, 2  ;;  %v495_v46 = vpop.permute.xlu1 %494  ;;  %v444_v52 = vmul.f32 0.00390625, %v437_v45 }
 0x11f   : > { %v501_v51 = vmul.f32 %v495_v46, %v404_v47 }
 0x120   : > { %v466_v41 = vadd.f32 %v465_v40, %v464_v39  ;;  %v508_v58 = vrot.slane %v444_v52, %v1312_v3 }
 0x121   : > { %v503_v57 = vadd.f32 %v501_v51, %v406_v54 }
 0x122   : > { %v467_v42 = vrot.slane %v466_v41, 1  ;;  %v530_v60 = vpop.permute.xlu1 %529 }
 0x123   : > { %v513_v61 = vadd.f32 %v508_v58, %v503_v57 }
 0x124   : > { %v468_v43 = vadd.f32 %v467_v42, %v466_v41 }
 0x125   : > { %v499_v48 = vpop.permute.xlu0 %498 }
 0x126   : > { %740 = vpush %v468_v43  ;;  %v502_v53 = vmul.f32 %v499_v48, %v405_v49  ;;  %v534_v2 = vpop.permute.xlu1 %533 }
 0x128   : > { %v504_v59 = vadd.f32 %v502_v53, %v407_v55 }
 0x12a   : > { %v514_v62 = vadd.f32 %v512_v56, %v504_v59 }
 0x157   : > { %s741_s28 = spop %740 }
 0x158   : > { %s472_s10 = smul.f32 0.00390625, %s741_s28 }
 0x15a   : > { %v515_v63 = vstv %s472_s10 }
 0x15b   : > { %v516_v0 = vadd.f32 %v515_v63, %v513_v61  ;;  %v517_v1 = vadd.f32 %v515_v63, %v514_v62 }
 0x15d   : > { %v536_v3 = vadd.f32 %v530_v60, %v516_v0  ;;  %v537_v4 = vadd.f32 %v534_v2, %v517_v1 }
 0x15f   : > { %538 = vst [vmem:[%s386_s27] sm:$0xff] %v536_v3  ;;  %539 = vst [vmem:[%s386_s27 + $0x8] sm:$0xff] %v537_v4 }
 0x160   : > { %930 = shalt.err (!%p927_p12)
}
 0x161   : > { %s931_s25 = scalar_lea.hbm %s1356_s20, 256  ;;  %s935_s15 = scalar_lea.hbm %s1421_s7, 512 }
 0x162   : > { %p932_p6 = scmp.ne.s32.totalorder %s1356_s20, %s931_s25  ;;  %p936_p13 = scmp.lt.u32.totalorder %s1356_s20, %s1421_s7 }
 0x163   : > { %p937_p1 = scmp.lt.u32.totalorder %s935_s15, %s931_s25  ;;  %p939_p9 = scmp.lt.u32.totalorder %s931_s25, %s1356_s20 }
 0x164   : > { %p933_p11 = pnand %p932_p6, %p1456_p7 }
 0x165   : > { %p938_p10 = por %p937_p1, %p936_p13 }
 0x166   : > { %p934_p0 = pneg %p933_p11 }
 0x167   : > { %p940_p3 = por %p939_p9, %p938_p10 }
 0x169   : > { %p941_p4 = pnand %p940_p3, %p934_p0 }
 0x16b   : > { %944 = shalt.err (!%p941_p4)
}
 0x16c   : > { %s1038_s27 = smov 128   ;;  %s1039_s14 = smov 8  }
 0x16d   : > { %748 = dma.vmem_to_hbm [thread:$0]  (%p1456_p7), %s1351_s22, 256, %s1356_s20, %s541_s16, %s1038_s27, %s1038_s27, %s1039_s14  }
 0x16e PF: > { %s1457_s24 = sld [smem:[#allocation20_spill]]  ;;  %s570_s18 = sand.u32 1, %s1009_s8  }
 0x16f   : > { %p1459_p2 = scmp.ge.s32.totalorder %s1029_s13, 2  ;;  %s571_s11 = scalar_lea.sflag [#allocation6], %s570_s18 }
 0x174   : > { %p1458_p8 = scmp.ne.s32.totalorder %s1457_s24, 0 }
 0x176   : > { %p760_p5 = pnand %p1459_p2, %p1458_p8 }
 0x178   : > { %992 = dma.done.wait (!%p760_p5), %s571_s11, 256  }
 0x179   : > { %994 = vsyncadd (!%p760_p5), %s571_s11, 4294967040  ;;  %s32_s13 = sadd.s32 1, %s1029_s13   ;;  %s1460_s1 = smov %s1249_s0 }
 0x17a   : > { %p29_p12 = scmp.ge.s32.totalorder %s32_s13, 4   ;;  %s1461_s21 = sld [smem:[#allocation16_spill]] }
 0x17b   : > { %s1462_s10 = sld [smem:[#allocation19_spill]]  ;;  %s1463_s11 = sld [smem:[#allocation17_spill]] }
 0x17c   : > { %s1464_s12 = sld [smem:[#allocation18_spill]]  ;;  %s1465_s0 = smov %s1001_s29 }
 0x17d   : > { %s1466_s29 = smov %s1005_s30  ;;  %s1467_s30 = smov %s1460_s1 }
 0x17e   : > { %s1468_s8 = smov %s1013_s9  ;;  %31 = sbr.rel (!%p29_p12) target bundleno = 25 (0x19), region = 114 }
 0x180   : > { %s1469_s9 = smov %s1461_s21 }
 0x185   :  { %576 = vsyncpa [#allocation5], 1 }
 0x186   :  { %578 = vsyncpa [#allocation5 + $0x1], 1 }
 0x187   :  { %579 = vsyncpa [#allocation8], 1 }
 0x188   :  { %581 = vsyncpa [#allocation8 + $0x1], 1 }
 0x189   :  { %582 = vsyncpa [#allocation6], 1 }
 0x18a   :  { %584 = vsyncpa [#allocation6 + $0x1], 1 }

</bundles_post_ra>
